<compile_context>
chip_gen: v6e
topology: v6e:2x2x1
jax: 0.10.0
libtpu: 0.0.40
codegen_flags: <defaults>
</compile_context>

<pallas_src>
import math

import jax
import jax.numpy as jnp
import numpy as np
from jax.experimental import pallas as pl
from jax.experimental.pallas import tpu as pltpu


def _gelu_tanh(x):
    c = math.sqrt(2.0 / math.pi)
    return 0.5 * x * (1.0 + jnp.tanh(c * (x + 0.044715 * (x * x * x))))


def _mlp_kernel(x_ref, w1_ref, b1_ref, w2_ref, b2_ref, o_ref):
    # x_ref:  (tm, d_p)   row tile of flattened activations
    # w1_ref: (d_p, D_p)  first linear, already (in, out)
    # b1_ref: (1, D_p)    f32
    # w2_ref: (D_p, d_p)  second linear, already (in, out)
    # b2_ref: (1, d_p)    f32
    # o_ref:  (tm, d_p)
    x = x_ref[...]
    h = jnp.dot(x, w1_ref[...], preferred_element_type=jnp.float32)
    h = h + b1_ref[...]
    h = _gelu_tanh(h)                 # Dropout(p=0.0) around GELU is identity
    h = h.astype(w2_ref.dtype)        # keep MXU operands in weight dtype (bf16-friendly)
    out = jnp.dot(h, w2_ref[...], preferred_element_type=jnp.float32)
    out = out + b2_ref[...]
    o_ref[...] = out.astype(o_ref.dtype)


def _round_up(x, m):
    return (x + m - 1) // m * m


def mlp_forward(z, w1, b1, w2, b2, *, block_rows=256):
    """MLP forward matching the PyTorch module.

    z:  (..., d)   activations (any number of leading dims)
    w1: (D, d), b1: (D,)   -- nn.Linear(d, D) weight/bias (PyTorch layout)
    w2: (d, D), b2: (d,)   -- nn.Linear(D, d) weight/bias (PyTorch layout)
    Returns an array with the same shape/dtype as z.
    """
    orig_shape = z.shape
    d = orig_shape[-1]
    D = w1.shape[0]
    assert w1.shape == (D, d), f"w1 expected {(D, d)}, got {w1.shape}"
    assert w2.shape == (d, D), f"w2 expected {(d, D)}, got {w2.shape}"
    dtype = z.dtype

    x = z.reshape(-1, d)
    m = x.shape[0]
    tm = block_rows if m >= block_rows else _round_up(m, 8)
    m_p = _round_up(m, tm)
    d_p = _round_up(d, 128)
    D_p = _round_up(D, 128)

    # One-time XLA-side transpose + zero pad to lane-dense, (8,128)-aligned shapes.
    x_p = jnp.pad(x, ((0, m_p - m), (0, d_p - d)))
    w1_p = jnp.pad(w1.T, ((0, d_p - d), (0, D_p - D)))                        # (d_p, D_p)
    b1_p = jnp.pad(b1.astype(jnp.float32).reshape(1, D), ((0, 0), (0, D_p - D)))
    w2_p = jnp.pad(w2.T, ((0, D_p - D), (0, d_p - d)))                        # (D_p, d_p)
    b2_p = jnp.pad(b2.astype(jnp.float32).reshape(1, d), ((0, 0), (0, d_p - d)))

    out_p = pl.pallas_call(
        _mlp_kernel,
        out_shape=jax.ShapeDtypeStruct((m_p, d_p), dtype),
        grid_spec=pltpu.PrefetchScalarGridSpec(
            num_scalar_prefetch=0,
            grid=(m_p // tm,),
            in_specs=[
                pl.BlockSpec((tm, d_p), lambda i: (i, 0)),    # activations: tiled over rows
                pl.BlockSpec((d_p, D_p), lambda i: (0, 0)),   # w1: resident in VMEM
                pl.BlockSpec((1, D_p), lambda i: (0, 0)),     # b1: resident
                pl.BlockSpec((D_p, d_p), lambda i: (0, 0)),   # w2: resident
                pl.BlockSpec((1, d_p), lambda i: (0, 0)),     # b2: resident
            ],
            out_specs=pl.BlockSpec((tm, d_p), lambda i: (i, 0)),
        ),
        compiler_params=pltpu.CompilerParams(
            dimension_semantics=("parallel",),     # row tiles are independent
            vmem_limit_bytes=64 * 1024 * 1024,     # fits within v7x's 64 MiB VMEM
        ),
    )(x_p, w1_p, b1_p, w2_p, b2_p)

    return out_p[:m, :d].reshape(orig_shape)


def mlp_reference(z, w1, b1, w2, b2):
    h = jnp.einsum('...d,od->...o', z, w1) + b1
    h = _gelu_tanh(h)
    return jnp.einsum('...o,do->...d', h, w2) + b2


if __name__ == "__main__":
    # Small shapes: batch=2, seq n=8, features d=32, hidden D=128.
    B, N, d, D = 2, 8, 32, 128

    key = jax.random.PRNGKey(0)
    kz, k1, kb1, k2, kb2 = jax.random.split(key, 5)
    z = jax.random.normal(kz, (B, N, d), dtype=jnp.float32)
    w1 = 0.1 * jax.random.normal(k1, (D, d), dtype=jnp.float32)
    b1 = 0.1 * jax.random.normal(kb1, (D,), dtype=jnp.float32)
    w2 = 0.1 * jax.random.normal(k2, (d, D), dtype=jnp.float32)
    b2 = 0.1 * jax.random.normal(kb2, (d,), dtype=jnp.float32)

    out = mlp_forward(z, w1, b1, w2, b2)
    out = jax.block_until_ready(out)

    ref = mlp_reference(z, w1, b1, w2, b2)
    np.testing.assert_allclose(np.asarray(out), np.asarray(ref), rtol=1e-4, atol=1e-4)

    print("KERNEL_OK")
</pallas_src>

<mosaic_0001>
module attributes {stable_mosaic.version = 11 : i64} {
  func.func @_mlp_kernel(%arg0: i32, %arg1: memref<16x128xf32, #tpu.memory_space<vmem>>, %arg2: memref<128x128xf32, #tpu.memory_space<vmem>>, %arg3: memref<1x128xf32, #tpu.memory_space<vmem>>, %arg4: memref<128x128xf32, #tpu.memory_space<vmem>>, %arg5: memref<1x128xf32, #tpu.memory_space<vmem>>, %arg6: memref<16x128xf32, #tpu.memory_space<vmem>>) attributes {dimension_semantics = [#tpu.dimension_semantics<parallel>], iteration_bounds = array<i64: 1>, scalar_prefetch = 0 : i64, scratch_operands = 0 : i64, tpu.core_type = #tpu.core_type<tc>, window_params = [{transform_indices = @transform_0, window_bounds = array<i64: 16, 128>}, {pipeline_mode = #tpu.pipeline_mode<synchronous>, transform_indices = @transform_1, window_bounds = array<i64: 128, 128>}, {pipeline_mode = #tpu.pipeline_mode<synchronous>, transform_indices = @transform_2, window_bounds = array<i64: 1, 128>}, {pipeline_mode = #tpu.pipeline_mode<synchronous>, transform_indices = @transform_3, window_bounds = array<i64: 128, 128>}, {pipeline_mode = #tpu.pipeline_mode<synchronous>, transform_indices = @transform_4, window_bounds = array<i64: 1, 128>}, {transform_indices = @transform_5, window_bounds = array<i64: 16, 128>}]} {
    %c0 = arith.constant 0 : index
    %c0_0 = arith.constant 0 : index
    %0 = vector.load %arg1[%c0, %c0_0] : memref<16x128xf32, #tpu.memory_space<vmem>>, vector<16x128xf32>
    %c0_1 = arith.constant 0 : index
    %c0_2 = arith.constant 0 : index
    %1 = vector.load %arg2[%c0_1, %c0_2] : memref<128x128xf32, #tpu.memory_space<vmem>>, vector<128x128xf32>
    %cst = arith.constant dense<0.000000e+00> : vector<16x128xf32>
    %2 = tpu.matmul %0, %1, %cst {dimension_numbers = #tpu.dot_dimension_numbers<[1], [0], [0], [1], [0, 0, 1, 1], [], []>} : vector<16x128xf32>, vector<128x128xf32>, vector<16x128xf32> -> vector<16x128xf32>
    %c0_3 = arith.constant 0 : index
    %c0_4 = arith.constant 0 : index
    %3 = vector.load %arg3[%c0_3, %c0_4] : memref<1x128xf32, #tpu.memory_space<vmem>>, vector<1x128xf32>
    %4 = vector.broadcast %3 : vector<1x128xf32> to vector<16x128xf32>
    %5 = arith.addf %2, %4 : vector<16x128xf32>
    %cst_5 = arith.constant 5.000000e-01 : f32
    %6 = vector.broadcast %cst_5 : f32 to vector<16x128xf32>
    %7 = arith.mulf %6, %5 : vector<16x128xf32>
    %8 = arith.mulf %5, %5 : vector<16x128xf32>
    %9 = arith.mulf %8, %5 : vector<16x128xf32>
    %cst_6 = arith.constant 4.471500e-02 : f32
    %10 = vector.broadcast %cst_6 : f32 to vector<16x128xf32>
    %11 = arith.mulf %10, %9 : vector<16x128xf32>
    %12 = arith.addf %5, %11 : vector<16x128xf32>
    %cst_7 = arith.constant 0.797884583 : f32
    %13 = vector.broadcast %cst_7 : f32 to vector<16x128xf32>
    %14 = arith.mulf %13, %12 : vector<16x128xf32>
    %15 = math.tanh %14 : vector<16x128xf32>
    %cst_8 = arith.constant 1.000000e+00 : f32
    %16 = vector.broadcast %cst_8 : f32 to vector<16x128xf32>
    %17 = arith.addf %16, %15 : vector<16x128xf32>
    %18 = arith.mulf %7, %17 : vector<16x128xf32>
    %c0_9 = arith.constant 0 : index
    %c0_10 = arith.constant 0 : index
    %19 = vector.load %arg4[%c0_9, %c0_10] : memref<128x128xf32, #tpu.memory_space<vmem>>, vector<128x128xf32>
    %cst_11 = arith.constant dense<0.000000e+00> : vector<16x128xf32>
    %20 = tpu.matmul %18, %19, %cst_11 {dimension_numbers = #tpu.dot_dimension_numbers<[1], [0], [0], [1], [0, 0, 1, 1], [], []>} : vector<16x128xf32>, vector<128x128xf32>, vector<16x128xf32> -> vector<16x128xf32>
    %c0_12 = arith.constant 0 : index
    %c0_13 = arith.constant 0 : index
    %21 = vector.load %arg5[%c0_12, %c0_13] : memref<1x128xf32, #tpu.memory_space<vmem>>, vector<1x128xf32>
    %22 = vector.broadcast %21 : vector<1x128xf32> to vector<16x128xf32>
    %23 = arith.addf %20, %22 : vector<16x128xf32>
    %c0_14 = arith.constant 0 : index
    %c0_15 = arith.constant 0 : index
    %24 = vector.load %arg6[%c0_14, %c0_15] : memref<16x128xf32, #tpu.memory_space<vmem>>, vector<16x128xf32>
    tpu.vector_store %arg6[%c0_14, %c0_15], %23 {strides = array<i32>} : memref<16x128xf32, #tpu.memory_space<vmem>>, vector<16x128xf32>,
    return
  }
  func.func @transform_0(%arg0: i32) -> (i32, i32) {
    %c0_i32 = arith.constant 0 : i32
    %c0_i32_0 = arith.constant 0 : i32
    return %arg0, %c0_i32 : i32, i32
  }
  func.func @transform_1(%arg0: i32) -> (i32, i32) {
    %c0_i32 = arith.constant 0 : i32
    %c0_i32_0 = arith.constant 0 : i32
    %c0_i32_1 = arith.constant 0 : i32
    return %c0_i32, %c0_i32_0 : i32, i32
  }
  func.func @transform_2(%arg0: i32) -> (i32, i32) {
    %c0_i32 = arith.constant 0 : i32
    %c0_i32_0 = arith.constant 0 : i32
    %c0_i32_1 = arith.constant 0 : i32
    return %c0_i32, %c0_i32_0 : i32, i32
  }
  func.func @transform_3(%arg0: i32) -> (i32, i32) {
    %c0_i32 = arith.constant 0 : i32
    %c0_i32_0 = arith.constant 0 : i32
    %c0_i32_1 = arith.constant 0 : i32
    return %c0_i32, %c0_i32_0 : i32, i32
  }
  func.func @transform_4(%arg0: i32) -> (i32, i32) {
    %c0_i32 = arith.constant 0 : i32
    %c0_i32_0 = arith.constant 0 : i32
    %c0_i32_1 = arith.constant 0 : i32
    return %c0_i32, %c0_i32_0 : i32, i32
  }
  func.func @transform_5(%arg0: i32) -> (i32, i32) {
    %c0_i32 = arith.constant 0 : i32
    %c0_i32_0 = arith.constant 0 : i32
    return %arg0, %c0_i32 : i32, i32
  }
}

</mosaic_0001>

<bundles_post_ra>
// kernel: tpu_custom_call.1
= control target key start
LH: loop header
LB: loop body
LE: loop exit
PB: predicated region body
PF: predicated region fallthrough
CT: control target
= control target key end

     0   :  { %10 = vsyncpa [#allocation3], 0  ;;  %s568_s0 = inlined_call_operand.hbm [shape: f32[16,128], index: 0, kind: input, shape index: {}]   ;;  %s569_s1 = inlined_call_operand.hbm [shape: f32[128,128], index: 1, kind: input, shape index: {}]   ;;  %s570_s2 = inlined_call_operand.vmem [shape: f32[1,128], index: 2, kind: input, shape index: {}]   ;;  %s571_s3 = inlined_call_operand.hbm [shape: f32[128,128], index: 3, kind: input, shape index: {}]   ;;  %s572_s4 = inlined_call_operand.vmem [shape: f32[1,128], index: 4, kind: input, shape index: {}]   ;;  %s573_s5 = inlined_call_operand.hbm [shape: f32[16,128], index: 5, kind: output, shape index: {}]  }
   0x1   :  { %11 = vsyncpa [#allocation6], 0 }
   0x2   :  { %12 = vsyncpa [#allocation4], 0  ;;  %s502_s18 = smov [#allocation5]   ;;  %s503_s20 = smov [#allocation2]  }
   0x3   :  { %s30_s19 = sshll.u32 %s502_s18, 4  ;;  %s18_s21 = sshll.u32 %s503_s20, 4  ;;  %s31_s19 = int_to_ptr.vmem [resolvable:$true] %s30_s19  ;;  %s19_s21 = int_to_ptr.vmem [resolvable:$true] %s18_s21 }
   0x4   :  { %s424_s22 = scalar_lea.vmem %s31_s19, 2048  ;;  %p429_p1 = scmp.lt.s32.totalorder %s31_s19, %s31_s19 }
   0x5   :  { %p425_p0 = scmp.ne.s32.totalorder %s31_s19, %s424_s22  ;;  %p430_p2 = scmp.lt.s32.totalorder %s424_s22, %s424_s22 }
   0x7   :  { %p431_p3 = por %p430_p2, %p429_p1 }
   0x9   :  { %p432_p4 = pnand %p431_p3, %p425_p0 }
   0xb   :  { %435 = shalt.err (!%p432_p4)
}
   0xc   :  { %s504_s23 = smov 128   ;;  %s505_s24 = smov 8  }
   0xd   :  { %36 = dma.hbm_to_vmem [thread:$0]  %s569_s1, 2048, %s31_s19, [#allocation6], %s504_s23, %s504_s23, %s505_s24  }
   0xe   :  { %s444_s27 = scalar_lea.vmem %s19_s21, 256  ;;  %p449_p6 = scmp.lt.s32.totalorder %s19_s21, %s19_s21 }
   0xf   :  { %p445_p5 = scmp.ne.s32.totalorder %s19_s21, %s444_s27  ;;  %p450_p7 = scmp.lt.s32.totalorder %s444_s27, %s444_s27 }
  0x11   :  { %p451_p8 = por %p450_p7, %p449_p6 }
  0x13   :  { %p452_p9 = pnand %p451_p8, %p445_p5 }
  0x15   :  { %455 = shalt.err (!%p452_p9)
}
  0x16   :  { %24 = dma.hbm_to_vmem [thread:$0]  %s568_s0, 256, %s19_s21, [#allocation3], %s504_s23, %s504_s23, %s505_s24  }
  0x17   :  { %s506_s30 = smov [#allocation7]  }
  0x18   :  { %s44_s6 = sshll.u32 %s506_s30, 4  ;;  %s45_s6 = int_to_ptr.vmem [resolvable:$true] %s44_s6 }
  0x19   :  { %s464_s7 = scalar_lea.vmem %s45_s6, 2048  ;;  %p469_p11 = scmp.lt.s32.totalorder %s45_s6, %s45_s6 }
  0x1a   :  { %p465_p10 = scmp.ne.s32.totalorder %s45_s6, %s464_s7  ;;  %p470_p12 = scmp.lt.s32.totalorder %s464_s7, %s464_s7 }
  0x1c   :  { %p471_p13 = por %p470_p12, %p469_p11 }
  0x1e   :  { %p472_p0 = pnand %p471_p13, %p465_p10 }
  0x20   :  { %475 = shalt.err (!%p472_p0)
}
  0x21   :  { %50 = dma.hbm_to_vmem [thread:$0]  %s571_s3, 2048, %s45_s6, [#allocation6], %s504_s23, %s504_s23, %s505_s24  }
  0x22   :  { %496 = dma.done.wait [#allocation3], 256  }
  0x23   :  { %497 = vsyncadd [#allocation3], 4294967040 }
  0x24   :  { %498 = dma.done.wait [#allocation6], 4096  }
  0x25   :  { %499 = vsyncadd [#allocation6], 4294963200  ;;  %v79_v0 = vld [vmem:[#allocation5 + $0x78] sm:$0xff]  ;;  %v78_v1 = vld [vmem:[#allocation5 + $0x70] sm:$0xff]  ;;  %s507_s10 = smov [#allocation8]  }
  0x26   :  { %336 = vmatprep.subr.mxu0 %v79_v0  ;;  %v77_v2 = vld [vmem:[#allocation5 + $0x68] sm:$0xff]  ;;  %v76_v3 = vld [vmem:[#allocation5 + $0x60] sm:$0xff]  ;;  %v62_v4 = vld [vmem:[#allocation2] sm:$0xff]  ;;  %s285_s11 = sshll.u32 %s507_s10, 4  ;;  %s286_s11 = int_to_ptr.vmem [resolvable:$true] %s285_s11 }
  0x27   :  { %337 = vmatpush3.msra.mxu0 %v79_v0  ;;  %v75_v5 = vld [vmem:[#allocation5 + $0x58] sm:$0xff]  ;;  %368 = vmatprep.mubr.f32.mxu0 %v62_v4  ;;  %v74_v6 = vld [vmem:[#allocation5 + $0x50] sm:$0xff]  ;;  %v73_v7 = vld [vmem:[#allocation5 + $0x48] sm:$0xff]  ;;  %s476_s12 = scalar_lea.vmem %s286_s11, 256  ;;  %p481_p2 = scmp.lt.s32.totalorder %s286_s11, %s286_s11 }
  0x28   :  { %338 = vmatprep.subr.mxu0 %v78_v1  ;;  %v72_v8 = vld [vmem:[#allocation5 + $0x40] sm:$0xff]  ;;  %v71_v9 = vld [vmem:[#allocation5 + $0x38] sm:$0xff]  ;;  %v70_v10 = vld [vmem:[#allocation5 + $0x30] sm:$0xff]  ;;  %p477_p1 = scmp.ne.s32.totalorder %s286_s11, %s476_s12  ;;  %p482_p3 = scmp.lt.s32.totalorder %s476_s12, %s476_s12 }
  0x29   :  { %339 = vmatpush3.msra.mxu0 %v78_v1  ;;  %v69_v11 = vld [vmem:[#allocation5 + $0x28] sm:$0xff]  ;;  %v68_v12 = vld [vmem:[#allocation5 + $0x20] sm:$0xff]  ;;  %v67_v13 = vld [vmem:[#allocation5 + $0x18] sm:$0xff] }
  0x2a   :  { %340 = vmatprep.subr.mxu0 %v77_v2  ;;  %v66_v14 = vld [vmem:[#allocation5 + $0x10] sm:$0xff]  ;;  %v65_v15 = vld [vmem:[#allocation5 + $0x8] sm:$0xff]  ;;  %v64_v16 = vld [vmem:[#allocation5] sm:$0xff]  ;;  %p483_p4 = por %p482_p3, %p481_p2 }
  0x2b   :  { %341 = vmatpush3.msra.mxu0 %v77_v2  ;;  %v63_v17 = vld [vmem:[#allocation2 + $0x8] sm:$0xff]  ;;  %v194_v19 = vld [vmem:[#allocation7 + $0x70] sm:$0xff]  ;;  %v193_v20 = vld [vmem:[#allocation7 + $0x68] sm:$0xff] }
  0x2c   :  { %342 = vmatprep.subr.mxu0 %v76_v3  ;;  %v195_v18 = vld [vmem:[#allocation7 + $0x78] sm:$0xff]  ;;  %v192_v21 = vld [vmem:[#allocation7 + $0x60] sm:$0xff]  ;;  %v190_v23 = vld [vmem:[#allocation7 + $0x50] sm:$0xff]  ;;  %p484_p5 = pnand %p483_p4, %p477_p1 }
  0x2d   :  { %343 = vmatpush3.msra.mxu0 %v76_v3  ;;  %371 = vmatprep.subr.mxu1 %v195_v18  ;;  %v191_v22 = vld [vmem:[#allocation7 + $0x58] sm:$0xff]  ;;  %v189_v24 = vld [vmem:[#allocation7 + $0x48] sm:$0xff]  ;;  %v188_v25 = vld [vmem:[#allocation7 + $0x40] sm:$0xff] }
  0x2e   :  { %344 = vmatprep.subr.mxu0 %v75_v5  ;;  %372 = vmatpush3.msra.mxu1 %v195_v18  ;;  %v187_v26 = vld [vmem:[#allocation7 + $0x38] sm:$0xff]  ;;  %v186_v27 = vld [vmem:[#allocation7 + $0x30] sm:$0xff]  ;;  %v185_v28 = vld [vmem:[#allocation7 + $0x28] sm:$0xff] }
  0x2f   :  { %345 = vmatpush3.msra.mxu0 %v75_v5  ;;  %373 = vmatprep.subr.mxu1 %v194_v19  ;;  %v184_v29 = vld [vmem:[#allocation7 + $0x20] sm:$0xff]  ;;  %v183_v30 = vld [vmem:[#allocation7 + $0x18] sm:$0xff]  ;;  %v182_v31 = vld [vmem:[#allocation7 + $0x10] sm:$0xff] }
  0x30   :  { %346 = vmatprep.subr.mxu0 %v74_v6  ;;  %374 = vmatpush3.msra.mxu1 %v194_v19  ;;  %v181_v32 = vld [vmem:[#allocation7 + $0x8] sm:$0xff]  ;;  %v180_v33 = vld [vmem:[#allocation7] sm:$0xff]  ;;  %v298_v34 = vld [vmem:[%s570_s2] ss:$0 sm:$0xff] }
  0x31   :  { %347 = vmatpush3.msra.mxu0 %v74_v6  ;;  %375 = vmatprep.subr.mxu1 %v193_v20  ;;  %v299_v57 = vld [vmem:[%s572_s4] ss:$0 sm:$0xff] }
  0x32   :  { %348 = vmatprep.subr.mxu0 %v73_v7  ;;  %376 = vmatpush3.msra.mxu1 %v193_v20 }
  0x33   :  { %349 = vmatpush3.msra.mxu0 %v73_v7  ;;  %377 = vmatprep.subr.mxu1 %v192_v21 }
  0x34   :  { %350 = vmatprep.subr.mxu0 %v72_v8  ;;  %378 = vmatpush3.msra.mxu1 %v192_v21 }
  0x35   :  { %351 = vmatpush3.msra.mxu0 %v72_v8  ;;  %379 = vmatprep.subr.mxu1 %v191_v22 }
  0x36   :  { %352 = vmatprep.subr.mxu0 %v71_v9  ;;  %380 = vmatpush3.msra.mxu1 %v191_v22 }
  0x37   :  { %353 = vmatpush3.msra.mxu0 %v71_v9  ;;  %381 = vmatprep.subr.mxu1 %v190_v23 }
  0x38   :  { %354 = vmatprep.subr.mxu0 %v70_v10  ;;  %382 = vmatpush3.msra.mxu1 %v190_v23 }
  0x39   :  { %355 = vmatpush3.msra.mxu0 %v70_v10  ;;  %383 = vmatprep.subr.mxu1 %v189_v24 }
  0x3a   :  { %356 = vmatprep.subr.mxu0 %v69_v11  ;;  %384 = vmatpush3.msra.mxu1 %v189_v24 }
  0x3b   :  { %357 = vmatpush3.msra.mxu0 %v69_v11  ;;  %385 = vmatprep.subr.mxu1 %v188_v25 }
  0x3c   :  { %358 = vmatprep.subr.mxu0 %v68_v12  ;;  %386 = vmatpush3.msra.mxu1 %v188_v25 }
  0x3d   :  { %359 = vmatpush3.msra.mxu0 %v68_v12  ;;  %387 = vmatprep.subr.mxu1 %v187_v26 }
  0x3e   :  { %360 = vmatprep.subr.mxu0 %v67_v13  ;;  %388 = vmatpush3.msra.mxu1 %v187_v26 }
  0x3f   :  { %361 = vmatpush3.msra.mxu0 %v67_v13  ;;  %389 = vmatprep.subr.mxu1 %v186_v27 }
  0x40   :  { %362 = vmatprep.subr.mxu0 %v66_v14  ;;  %390 = vmatpush3.msra.mxu1 %v186_v27 }
  0x41   :  { %363 = vmatpush3.msra.mxu0 %v66_v14  ;;  %391 = vmatprep.subr.mxu1 %v185_v28 }
  0x42   :  { %364 = vmatprep.subr.mxu0 %v65_v15  ;;  %392 = vmatpush3.msra.mxu1 %v185_v28 }
  0x43   :  { %365 = vmatpush3.msra.mxu0 %v65_v15  ;;  %393 = vmatprep.subr.mxu1 %v184_v29 }
  0x44   :  { %366 = vmatprep.subr.mxu0 %v64_v16  ;;  %394 = vmatpush3.msra.mxu1 %v184_v29 }
  0x45   :  { %367 = vmatpush3.msra.mxu0 %v64_v16  ;;  %395 = vmatprep.subr.mxu1 %v183_v30 }
  0x46   :  { %369 = vmatmul.mubr.f32.vlgmr.msra.gmra.mxu0 %v63_v17  ;;  %396 = vmatpush3.msra.mxu1 %v183_v30 }
  0x47   :  { %397 = vmatprep.subr.mxu1 %v182_v31 }
  0x48   :  { %398 = vmatpush3.msra.mxu1 %v182_v31 }
  0x49   :  { %399 = vmatprep.subr.mxu1 %v181_v32 }
  0x4a   :  { %400 = vmatpush3.msra.mxu1 %v181_v32 }
  0x4b   :  { %401 = vmatprep.subr.mxu1 %v180_v33 }
  0x4c   :  { %402 = vmatpush3.msra.mxu1 %v180_v33 }
 0x106   :  { %v370_v35 = vpop.f32.mrf.mxu0 }
 0x107   :  { %v159_v36 = vadd.f32 %v370_v35, %v298_v34 }
 0x108   :  { %v153_v37 = vpop.f32.mrf.mxu0 }
 0x109   :  { %v165_v38 = vmul.f32 %v159_v36, %v159_v36  ;;  %v154_v39 = vadd.f32 %v298_v34, %v153_v37  ;;  %v163_v54 = vmul.f32 0.5, %v159_v36 }
 0x10b   :  { %v167_v40 = vmul.f32 %v165_v38, %v159_v36  ;;  %v164_v41 = vmul.f32 %v154_v39, %v154_v39  ;;  %v162_v52 = vmul.f32 0.5, %v154_v39 }
 0x10d   :  { %v169_v42 = vmul.f32 0.044715, %v167_v40  ;;  %v166_v43 = vmul.f32 %v164_v41, %v154_v39 }
 0x10f   :  { %v171_v44 = vadd.f32 %v169_v42, %v159_v36  ;;  %v168_v45 = vmul.f32 0.044715, %v166_v43 }
 0x111   :  { %v173_v46 = vmul.f32 0.7978846, %v171_v44  ;;  %v170_v47 = vadd.f32 %v168_v45, %v154_v39 }
 0x113   :  { %v172_v48 = vmul.f32 0.7978846, %v170_v47  ;;  %412 = vtanh.f32 %v173_v46 }
 0x115   :  { %414 = vtanh.f32 %v172_v48 }
 0x120   :  { %v413_v49 = vpop.eup %412 }
 0x121   :  { %v177_v51 = vadd.f32 1.0, %v413_v49 }
 0x122   :  { %v415_v50 = vpop.eup %414 }
 0x123   :  { %v176_v53 = vadd.f32 1.0, %v415_v50  ;;  %v179_v56 = vmul.f32 %v177_v51, %v163_v54 }
 0x125   :  { %v178_v55 = vmul.f32 %v176_v53, %v162_v52 }
 0x127   :  { %403 = vmatprep.mubr.f32.mxu1 %v178_v55 }
 0x128   :  { %404 = vmatmul.mubr.f32.vlgmr.msra.gmra.mxu1 %v179_v56 }
 0x1e8   :  { %v405_v58 = vpop.f32.mrf.mxu1 }
 0x1e9   :  { %v275_v59 = vadd.f32 %v405_v58, %v299_v57 }
 0x1ea   :  { %v269_v60 = vpop.f32.mrf.mxu1 }
 0x1eb   :  { %279 = vst [vmem:[#allocation8 + $0x8] sm:$0xff] %v275_v59  ;;  %v270_v61 = vadd.f32 %v299_v57, %v269_v60 }
 0x1ed   :  { %278 = vst [vmem:[#allocation8] sm:$0xff] %v270_v61 }
 0x1ee   :  { %487 = shalt.err (!%p484_p5)
}
 0x1ef   :  { %291 = dma.vmem_to_hbm [thread:$0]  %s286_s11, 256, %s573_s5, [#allocation4], %s504_s23, %s504_s23, %s505_s24  }
 0x1f0   :  { %500 = dma.done.wait [#allocation4], 256  }
 0x1f1   :  { %501 = vsyncadd [#allocation4], 4294967040 }
 0x1f2   :  { %295 = vsyncpa [#allocation3], 1 }
 0x1f3   :  { %296 = vsyncpa [#allocation6], 1 }
 0x1f4   :  { %297 = vsyncpa [#allocation4], 1 }

</bundles_post_ra>
